<compile_context>
chip_gen: v5e
topology: v5e:2x2
jax: 0.10.0
libtpu: 0.0.40
codegen_flags: <defaults>
</compile_context>

<pallas_src>
import jax
import jax.numpy as jnp
from jax.experimental import pallas as pl
from jax.experimental.pallas import tpu as pltpu


# ----------------------------------------------------------------------------
# Pallas kernel: fused fc1->relu->fc2->relu->fc3->relu->fc4 (mean only).
# ----------------------------------------------------------------------------
def _gaussian_decoder_kernel(
    z_ref,
    w1_ref, b1_ref,
    w2_ref, b2_ref,
    w3_ref, b3_ref,
    w4_ref, b4_ref,
    mean_ref,
):
    # z tile is bf16; weights are bf16; accumulate every matmul in f32.
    h = z_ref[...]

    h = jnp.dot(h, w1_ref[...], preferred_element_type=jnp.float32) + b1_ref[...]
    h = jnp.maximum(h, 0.0).astype(jnp.bfloat16)

    h = jnp.dot(h, w2_ref[...], preferred_element_type=jnp.float32) + b2_ref[...]
    h = jnp.maximum(h, 0.0).astype(jnp.bfloat16)

    h = jnp.dot(h, w3_ref[...], preferred_element_type=jnp.float32) + b3_ref[...]
    h = jnp.maximum(h, 0.0).astype(jnp.bfloat16)

    out = jnp.dot(h, w4_ref[...], preferred_element_type=jnp.float32) + b4_ref[...]
    mean_ref[...] = out.astype(mean_ref.dtype)


def _choose_block_b(batch, *, max_block=1024, min_steps=2):
    """Largest sublane-aligned batch tile that still yields >= min_steps grid
    steps (so a v7x chip can shard the batch over its 2 TensorCores)."""
    if batch <= 8:
        return batch                      # single tiny step; block == full dim
    target = pl.cdiv(batch, min_steps)
    block = min(max_block, target)
    block = max(8, (block // 8) * 8)      # keep the sublane dim 8-aligned
    return block


def gaussian_decoder_forward(z, params, *, max_block_b=1024, min_grid_steps=2):
    """Fused decoder forward.  Returns (mean, scale) of Independent(Normal, 1);
    scale is identically one, so it is produced in the wrapper, not the kernel."""
    w1, b1, w2, b2, w3, b3, w4, b4 = params
    B, latent_dim = z.shape
    d1, d2, d3 = w1.shape[1], w2.shape[1], w3.shape[1]
    out_dim = w4.shape[1]

    block_b = _choose_block_b(B, max_block=max_block_b, min_steps=min_grid_steps)
    grid_b = pl.cdiv(B, block_b)
    b_pad = grid_b * block_b

    # bf16 input halves the z DMA bytes and matches the bf16 MXU path.
    z_in = z.astype(jnp.bfloat16)
    if b_pad != B:
        z_in = jnp.pad(z_in, ((0, b_pad - B), (0, 0)))

    # Weights / biases: whole array resident, same block for every grid step.
    def _full(shape):
        ndim = len(shape)
        return pl.BlockSpec(shape, lambda i, _n=ndim: (0,) * _n)

    flops = 2 * b_pad * (latent_dim * d1 + d1 * d2 + d2 * d3 + d3 * out_dim)
    bytes_accessed = (
        int(z_in.size) * z_in.dtype.itemsize
        + sum(int(p.size) * p.dtype.itemsize for p in params)
        + b_pad * out_dim * 4
    )

    mean = pl.pallas_call(
        _gaussian_decoder_kernel,
        out_shape=jax.ShapeDtypeStruct((b_pad, out_dim), jnp.float32),
        grid_spec=pltpu.PrefetchScalarGridSpec(
            num_scalar_prefetch=0,
            grid=(grid_b,),
            in_specs=[
                pl.BlockSpec((block_b, latent_dim), lambda i: (i, 0)),  # z tile
                _full(w1.shape), _full(b1.shape),
                _full(w2.shape), _full(b2.shape),
                _full(w3.shape), _full(b3.shape),
                _full(w4.shape), _full(b4.shape),
            ],
            out_specs=pl.BlockSpec((block_b, out_dim), lambda i: (i, 0)),
        ),
        compiler_params=pltpu.CompilerParams(
            dimension_semantics=("parallel",),
        ),
        cost_estimate=pl.CostEstimate(
            flops=flops, transcendentals=0, bytes_accessed=bytes_accessed),
    )(z_in, w1, b1, w2, b2, w3, b3, w4, b4)

    if b_pad != B:
        mean = mean[:B]
    # covs = ones_like(x); scale = covs.sqrt() = ones — compile-time constant,
    # produced here instead of burning a second store stream in the kernel.
    scale = jnp.ones((B, out_dim), dtype=mean.dtype)
    return mean, scale


# ----------------------------------------------------------------------------
# Deterministic parameter init (mirrors nn.Linear shapes; stored transposed).
# Weights are bf16 (MXU-native); biases stay f32 for the f32 bias-add path.
# ----------------------------------------------------------------------------
def init_params(key, latent_dim, layers_dims, output_dim):
    dims = [latent_dim, layers_dims[0], layers_dims[1], layers_dims[2], output_dim]
    params = []
    for fan_in, fan_out in zip(dims[:-1], dims[1:]):
        key, wk, bk = jax.random.split(key, 3)
        bound = 1.0 / jnp.sqrt(fan_in)
        # (in, out) layout == transpose of PyTorch's (out, in)
        w = jax.random.uniform(wk, (fan_in, fan_out), jnp.float32, -bound, bound)
        b = jax.random.uniform(bk, (1, fan_out), jnp.float32, -bound, bound)
        params += [w.astype(jnp.bfloat16), b]
    return tuple(params)


def reference_forward(z, params):
    """Pure-JAX reference mirroring the kernel's precision path."""
    w1, b1, w2, b2, w3, b3, w4, b4 = params
    h = z.astype(jnp.bfloat16)
    for w, b in ((w1, b1), (w2, b2), (w3, b3)):
        h = jnp.dot(h, w, preferred_element_type=jnp.float32) + b
        h = jnp.maximum(h, 0.0).astype(jnp.bfloat16)
    mean = jnp.dot(h, w4, preferred_element_type=jnp.float32) + b4
    return mean, jnp.ones_like(mean)


if __name__ == "__main__":
    # Small shapes consistent with the module's forward.
    batch = 16
    latent_dim = 32
    layers_dims = [64, 64, 32]
    output_dim = 16

    key = jax.random.PRNGKey(0)
    key, zk = jax.random.split(key)
    z = jax.random.normal(zk, (batch, latent_dim), jnp.float32)

    params = init_params(key, latent_dim, layers_dims, output_dim)

    fwd = jax.jit(gaussian_decoder_forward)
    mean, scale = fwd(z, params)
    jax.block_until_ready((mean, scale))

    # Correctness check against a pure-JAX reference with the same bf16 path.
    ref_mean, ref_scale = reference_forward(z, params)
    assert mean.shape == (batch, output_dim)
    assert scale.shape == (batch, output_dim)
    assert jnp.allclose(mean, ref_mean, atol=1e-3, rtol=1e-3)
    assert jnp.all(scale == 1.0)

    # Also exercise a batch that is NOT a multiple of the tile (pad/slice path).
    z_odd = jax.random.normal(jax.random.PRNGKey(2), (13, latent_dim), jnp.float32)
    mean_odd, scale_odd = fwd(z_odd, params)
    jax.block_until_ready((mean_odd, scale_odd))
    ref_odd, _ = reference_forward(z_odd, params)
    assert mean_odd.shape == (13, output_dim)
    assert jnp.allclose(mean_odd, ref_odd, atol=1e-3, rtol=1e-3)

    # TODO(synk): torch.distributions.Independent(Normal(...), 1) has no Pallas
    # equivalent; the distribution is represented by the (mean, scale) pair.
    print("KERNEL_OK")
</pallas_src>

<mosaic_0001>
module attributes {stable_mosaic.version = 11 : i64} {
  func.func @_gaussian_decoder_kernel(%arg0: i32, %arg1: memref<8x32xbf16, #tpu.memory_space<vmem>>, %arg2: memref<32x64xbf16, #tpu.memory_space<vmem>>, %arg3: memref<1x64xf32, #tpu.memory_space<vmem>>, %arg4: memref<64x64xbf16, #tpu.memory_space<vmem>>, %arg5: memref<1x64xf32, #tpu.memory_space<vmem>>, %arg6: memref<64x32xbf16, #tpu.memory_space<vmem>>, %arg7: memref<1x32xf32, #tpu.memory_space<vmem>>, %arg8: memref<32x16xbf16, #tpu.memory_space<vmem>>, %arg9: memref<1x16xf32, #tpu.memory_space<vmem>>, %arg10: memref<8x16xf32, #tpu.memory_space<vmem>>) attributes {dimension_semantics = [#tpu.dimension_semantics<parallel>], iteration_bounds = array<i64: 2>, scalar_prefetch = 0 : i64, scratch_operands = 0 : i64, tpu.core_type = #tpu.core_type<tc>, window_params = [{transform_indices = @transform_0, window_bounds = array<i64: 8, 32>}, {pipeline_mode = #tpu.pipeline_mode<synchronous>, transform_indices = @transform_1, window_bounds = array<i64: 32, 64>}, {pipeline_mode = #tpu.pipeline_mode<synchronous>, transform_indices = @transform_2, window_bounds = array<i64: 1, 64>}, {pipeline_mode = #tpu.pipeline_mode<synchronous>, transform_indices = @transform_3, window_bounds = array<i64: 64, 64>}, {pipeline_mode = #tpu.pipeline_mode<synchronous>, transform_indices = @transform_4, window_bounds = array<i64: 1, 64>}, {pipeline_mode = #tpu.pipeline_mode<synchronous>, transform_indices = @transform_5, window_bounds = array<i64: 64, 32>}, {pipeline_mode = #tpu.pipeline_mode<synchronous>, transform_indices = @transform_6, window_bounds = array<i64: 1, 32>}, {pipeline_mode = #tpu.pipeline_mode<synchronous>, transform_indices = @transform_7, window_bounds = array<i64: 32, 16>}, {pipeline_mode = #tpu.pipeline_mode<synchronous>, transform_indices = @transform_8, window_bounds = array<i64: 1, 16>}, {transform_indices = @transform_9, window_bounds = array<i64: 8, 16>}]} {
    %c0 = arith.constant 0 : index
    %c0_0 = arith.constant 0 : index
    %0 = vector.load %arg1[%c0, %c0_0] : memref<8x32xbf16, #tpu.memory_space<vmem>>, vector<8x32xbf16>
    %c0_1 = arith.constant 0 : index
    %c0_2 = arith.constant 0 : index
    %1 = vector.load %arg2[%c0_1, %c0_2] : memref<32x64xbf16, #tpu.memory_space<vmem>>, vector<32x64xbf16>
    %cst = arith.constant dense<0.000000e+00> : vector<8x64xf32>
    %2 = tpu.matmul %0, %1, %cst {dimension_numbers = #tpu.dot_dimension_numbers<[1], [0], [0], [1], [0, 0, 1, 1], [], []>} : vector<8x32xbf16>, vector<32x64xbf16>, vector<8x64xf32> -> vector<8x64xf32>
    %c0_3 = arith.constant 0 : index
    %c0_4 = arith.constant 0 : index
    %3 = vector.load %arg3[%c0_3, %c0_4] : memref<1x64xf32, #tpu.memory_space<vmem>>, vector<1x64xf32>
    %4 = vector.broadcast %3 : vector<1x64xf32> to vector<8x64xf32>
    %5 = arith.addf %2, %4 : vector<8x64xf32>
    %cst_5 = arith.constant 0.000000e+00 : f32
    %6 = vector.broadcast %cst_5 : f32 to vector<8x64xf32>
    %7 = arith.maximumf %5, %6 : vector<8x64xf32>
    %8 = arith.truncf %7 : vector<8x64xf32> to vector<8x64xbf16>
    %c0_6 = arith.constant 0 : index
    %c0_7 = arith.constant 0 : index
    %9 = vector.load %arg4[%c0_6, %c0_7] : memref<64x64xbf16, #tpu.memory_space<vmem>>, vector<64x64xbf16>
    %cst_8 = arith.constant dense<0.000000e+00> : vector<8x64xf32>
    %10 = tpu.matmul %8, %9, %cst_8 {dimension_numbers = #tpu.dot_dimension_numbers<[1], [0], [0], [1], [0, 0, 1, 1], [], []>} : vector<8x64xbf16>, vector<64x64xbf16>, vector<8x64xf32> -> vector<8x64xf32>
    %c0_9 = arith.constant 0 : index
    %c0_10 = arith.constant 0 : index
    %11 = vector.load %arg5[%c0_9, %c0_10] : memref<1x64xf32, #tpu.memory_space<vmem>>, vector<1x64xf32>
    %12 = vector.broadcast %11 : vector<1x64xf32> to vector<8x64xf32>
    %13 = arith.addf %10, %12 : vector<8x64xf32>
    %cst_11 = arith.constant 0.000000e+00 : f32
    %14 = vector.broadcast %cst_11 : f32 to vector<8x64xf32>
    %15 = arith.maximumf %13, %14 : vector<8x64xf32>
    %16 = arith.truncf %15 : vector<8x64xf32> to vector<8x64xbf16>
    %c0_12 = arith.constant 0 : index
    %c0_13 = arith.constant 0 : index
    %17 = vector.load %arg6[%c0_12, %c0_13] : memref<64x32xbf16, #tpu.memory_space<vmem>>, vector<64x32xbf16>
    %cst_14 = arith.constant dense<0.000000e+00> : vector<8x32xf32>
    %18 = tpu.matmul %16, %17, %cst_14 {dimension_numbers = #tpu.dot_dimension_numbers<[1], [0], [0], [1], [0, 0, 1, 1], [], []>} : vector<8x64xbf16>, vector<64x32xbf16>, vector<8x32xf32> -> vector<8x32xf32>
    %c0_15 = arith.constant 0 : index
    %c0_16 = arith.constant 0 : index
    %19 = vector.load %arg7[%c0_15, %c0_16] : memref<1x32xf32, #tpu.memory_space<vmem>>, vector<1x32xf32>
    %20 = vector.broadcast %19 : vector<1x32xf32> to vector<8x32xf32>
    %21 = arith.addf %18, %20 : vector<8x32xf32>
    %cst_17 = arith.constant 0.000000e+00 : f32
    %22 = vector.broadcast %cst_17 : f32 to vector<8x32xf32>
    %23 = arith.maximumf %21, %22 : vector<8x32xf32>
    %24 = arith.truncf %23 : vector<8x32xf32> to vector<8x32xbf16>
    %c0_18 = arith.constant 0 : index
    %c0_19 = arith.constant 0 : index
    %25 = vector.load %arg8[%c0_18, %c0_19] : memref<32x16xbf16, #tpu.memory_space<vmem>>, vector<32x16xbf16>
    %cst_20 = arith.constant dense<0.000000e+00> : vector<8x16xf32>
    %26 = tpu.matmul %24, %25, %cst_20 {dimension_numbers = #tpu.dot_dimension_numbers<[1], [0], [0], [1], [0, 0, 1, 1], [], []>} : vector<8x32xbf16>, vector<32x16xbf16>, vector<8x16xf32> -> vector<8x16xf32>
    %c0_21 = arith.constant 0 : index
    %c0_22 = arith.constant 0 : index
    %27 = vector.load %arg9[%c0_21, %c0_22] : memref<1x16xf32, #tpu.memory_space<vmem>>, vector<1x16xf32>
    %28 = vector.broadcast %27 : vector<1x16xf32> to vector<8x16xf32>
    %29 = arith.addf %26, %28 : vector<8x16xf32>
    %c0_23 = arith.constant 0 : index
    %c0_24 = arith.constant 0 : index
    %30 = vector.load %arg10[%c0_23, %c0_24] : memref<8x16xf32, #tpu.memory_space<vmem>>, vector<8x16xf32>
    tpu.vector_store %arg10[%c0_23, %c0_24], %29 {strides = array<i32>} : memref<8x16xf32, #tpu.memory_space<vmem>>, vector<8x16xf32>,
    return
  }
  func.func @transform_0(%arg0: i32) -> (i32, i32) {
    %c0_i32 = arith.constant 0 : i32
    %c0_i32_0 = arith.constant 0 : i32
    return %arg0, %c0_i32 : i32, i32
  }
  func.func @transform_1(%arg0: i32) -> (i32, i32) {
    %c0_i32 = arith.constant 0 : i32
    %c0_i32_0 = arith.constant 0 : i32
    %c0_i32_1 = arith.constant 0 : i32
    return %c0_i32, %c0_i32_0 : i32, i32
  }
  func.func @transform_2(%arg0: i32) -> (i32, i32) {
    %c0_i32 = arith.constant 0 : i32
    %c0_i32_0 = arith.constant 0 : i32
    %c0_i32_1 = arith.constant 0 : i32
    return %c0_i32, %c0_i32_0 : i32, i32
  }
  func.func @transform_3(%arg0: i32) -> (i32, i32) {
    %c0_i32 = arith.constant 0 : i32
    %c0_i32_0 = arith.constant 0 : i32
    %c0_i32_1 = arith.constant 0 : i32
    return %c0_i32, %c0_i32_0 : i32, i32
  }
  func.func @transform_4(%arg0: i32) -> (i32, i32) {
    %c0_i32 = arith.constant 0 : i32
    %c0_i32_0 = arith.constant 0 : i32
    %c0_i32_1 = arith.constant 0 : i32
    return %c0_i32, %c0_i32_0 : i32, i32
  }
  func.func @transform_5(%arg0: i32) -> (i32, i32) {
    %c0_i32 = arith.constant 0 : i32
    %c0_i32_0 = arith.constant 0 : i32
    %c0_i32_1 = arith.constant 0 : i32
    return %c0_i32, %c0_i32_0 : i32, i32
  }
  func.func @transform_6(%arg0: i32) -> (i32, i32) {
    %c0_i32 = arith.constant 0 : i32
    %c0_i32_0 = arith.constant 0 : i32
    %c0_i32_1 = arith.constant 0 : i32
    return %c0_i32, %c0_i32_0 : i32, i32
  }
  func.func @transform_7(%arg0: i32) -> (i32, i32) {
    %c0_i32 = arith.constant 0 : i32
    %c0_i32_0 = arith.constant 0 : i32
    %c0_i32_1 = arith.constant 0 : i32
    return %c0_i32, %c0_i32_0 : i32, i32
  }
  func.func @transform_8(%arg0: i32) -> (i32, i32) {
    %c0_i32 = arith.constant 0 : i32
    %c0_i32_0 = arith.constant 0 : i32
    %c0_i32_1 = arith.constant 0 : i32
    return %c0_i32, %c0_i32_0 : i32, i32
  }
  func.func @transform_9(%arg0: i32) -> (i32, i32) {
    %c0_i32 = arith.constant 0 : i32
    %c0_i32_0 = arith.constant 0 : i32
    return %arg0, %c0_i32 : i32, i32
  }
}

</mosaic_0001>

<bundles_post_ra>
// kernel: gaussian_decoder_forward.1
= control target key start
LH: loop header
LB: loop body
LE: loop exit
PB: predicated region body
PF: predicated region fallthrough
CT: control target
= control target key end

     0   :  { %s957_s0 = inlined_call_operand.vmem [shape: bf16[16,32], index: 0, kind: input, shape index: {}]   ;;  %s958_s1 = inlined_call_operand.vmem [shape: bf16[32,64], index: 1, kind: input, shape index: {}]   ;;  %s959_s2 = inlined_call_operand.vmem [shape: f32[1,64], index: 2, kind: input, shape index: {}]   ;;  %s960_s3 = inlined_call_operand.vmem [shape: bf16[64,64], index: 3, kind: input, shape index: {}]   ;;  %s961_s4 = inlined_call_operand.vmem [shape: f32[1,64], index: 4, kind: input, shape index: {}]   ;;  %s962_s5 = inlined_call_operand.vmem [shape: bf16[64,32], index: 5, kind: input, shape index: {}]   ;;  %s963_s6 = inlined_call_operand.vmem [shape: f32[1,32], index: 6, kind: input, shape index: {}]   ;;  %s964_s7 = inlined_call_operand.vmem [shape: bf16[32,16], index: 7, kind: input, shape index: {}]   ;;  %s965_s8 = inlined_call_operand.vmem [shape: f32[1,16], index: 8, kind: input, shape index: {}]   ;;  %s966_s9 = inlined_call_operand.hbm [shape: f32[16,16], index: 9, kind: output, shape index: {}]  }
   0x1   :  { %967 = sst [smem:[#allocation5_spill]] %s957_s0 }
   0x2   :  { %14 = vsyncpa [#allocation3], 0 }
   0x3   :  { %16 = vsyncpa [#allocation3 + $0x1], 0  ;;  %s822_s30 = smov 0   ;;  %s824_s10 = smov 0  }
   0x4   :  { %s826_s11 = smov 0   ;;  %s828_s12 = smov 0  }
   0x5 LB: > { %s843_s13 = sadd.s32 4294967295, %s770_s12   ;;  %s591_s14 = sadd.s32 4294967294, %s770_s12   ;;  %s770_s12 = sphi %s828_s12, %s974_s12   ;;  %s766_s11 = sphi %s826_s11, %s973_s11   ;;  %s762_s10 = sphi %s824_s10, %s972_s10   ;;  %s758_s30 = sphi %s822_s30, %s971_s30  }
   0x6   : > { %s847_s15 = sadd.s32 1, %s770_s12   ;;  %s223_s16 = sadd.s32 1, %s766_s11 }
   0x7   : > { %s220_s17 = ssub.s32 %s770_s12, %s847_s15  ;;  %p233_p0 = scmp.ne.s32.totalorder %s766_s11, %s762_s10 }
   0x8   : > { %p221_p1 = scmp.eq.s32.totalorder %s220_s17, 0  ;;  %p234_p2 = scmp.eq.s32.totalorder %s843_s13, 1 }
   0x9   : > { %p239_p3 = scmp.ne.s32.totalorder %s762_s10, %s758_s30  ;;  %p240_p4 = scmp.eq.s32.totalorder %s591_s14, 1 }
   0xa   : > { %s858_s18 = scalar_select %p221_p1, %s766_s11, %s223_s16  }
   0xb   : > { %p860_p5 = por %p234_p2, %p233_p0  ;;  %p864_p6 = por %p240_p4, %p239_p3 }
   0xc   : > { %p594_p7 = scmp.ge.s32.totalorder %s770_s12, 1  ;;  %p289_p8 = scmp.lt.s32.totalorder %s770_s12, 3 }
   0xe   : > { %p290_p9 = pnand %p594_p7, %p289_p8 }
   0xf   : > { %p324_p10 = scmp.lt.s32.totalorder (!%p290_p9), %s843_s13, 1  ;;  %s970_s0 = sld [smem:[#allocation5_spill]] (!%p290_p9) }
  0x10   : > { %293 = sbr.rel (%p290_p9) target bundleno = 571 (0x23b), region = 56  ;;  %s321_s17 = sand.u32 (!%p290_p9), 1, %s762_s10  }
  0x11   : > { %s595_s22 = sshll.u32 (!%p290_p9), %s321_s17, 3 }
  0x12   : > { %s323_s28 = scalar_lea.vmem (!%p290_p9), [#allocation2], %s595_s22  ;;  %s728_s22 = scalar_lea.hbm (!%p290_p9), %s966_s9, 16 }
  0x13   : > { %s529_s29 = sshll.u32 (!%p290_p9), %s323_s28, 4  ;;  %s530_s29 = int_to_ptr.vmem [resolvable:$true] %s529_s29 }
  0x15   : > { %v654_v0 = vld [vmem:[%s958_s1 + $0x8] sm:$0xff]  ;;  %v658_v1 = vld [vmem:[%s960_s3 + $0x18] sm:$0xff]  ;;  %v653_v2 = vld [vmem:[%s958_s1] sm:$0xff]  ;;  %s325_s27 = scalar_select %p324_p10, %s843_s13, 1  ;;  %vm350_vm0 = vcmask 261120   ;;  %vm405_vm1 = vcmask 523264  }
  0x16   : > { %360 = vmatpush.bf16.msra.mxu0 %v654_v0  ;;  %413 = vmatpush.bf16.msra.mxu1 %v658_v1  ;;  %v657_v3 = vld [vmem:[%s960_s3 + $0x10] sm:$0xff]  ;;  %v656_v5 = vld [vmem:[%s960_s3 + $0x8] sm:$0xff]  ;;  %v655_v6 = vld [vmem:[%s960_s3] sm:$0xff]  ;;  %vm514_vm2 = vcmask 130048  }
  0x17   : > { %s596_s14 = sshll.u32 %s325_s27, 2  ;;  %v662_v7 = vld [vmem:[%s962_s5 + $0x18] sm:$0xff]  ;;  %v661_v8 = vld [vmem:[%s962_s5 + $0x10] sm:$0xff]  ;;  %v704_v9 = vld [vmem:[%s959_s2] ss:$0 sm:$0xff] }
  0x18   : > { %s327_s21 = scalar_lea.vmem %s970_s0, %s596_s14  ;;  %467 = vmatpush.bf16.msra.mxu2 %v662_v7  ;;  %v660_v15 = vld [vmem:[%s962_s5 + $0x8] sm:$0xff]  ;;  %v659_v16 = vld [vmem:[%s962_s5] sm:$0xff] }
  0x19   : > { %v329_v4 = vld [vmem:[%s327_s21] sm:$0xf]  ;;  %v664_v23 = vld [vmem:[%s964_s7 + $0x8] sm:$0xff]  ;;  %s650_s21 = sshll.u32 %s843_s13, 3  ;;  %s517_s13 = scalar_lea.sflag [#allocation3], %s321_s17 }
  0x1a   : > { %361 = vmatpush.bf16.msra.mxu0 %v653_v2  ;;  %414 = vmatpush.bf16.msra.mxu1 %v657_v3  ;;  %v705_v17 = vld [vmem:[%s961_s4] ss:$0 sm:$0xff]  ;;  %s527_s25 = scalar_lea.hbm %s966_s9, %s650_s21 }
  0x1b   : > { %507 = vmatpush.bf16.msra.mxu3 %v664_v23  ;;  %v663_v24 = vld [vmem:[%s964_s7] sm:$0xff]  ;;  %s531_s14 = sshll.u32 %s527_s25, 4  ;;  %s532_s14 = int_to_ptr.hbm [resolvable:$true] %s531_s14 }
  0x1c   : > { %468 = vmatpush.bf16.msra.mxu2 %v661_v8  ;;  %v706_v25 = vld [vmem:[%s963_s6] ss:$0 sm:$0xff]  ;;  %s722_s16 = sshra.s32 %s532_s14, 4  ;;  %s723_s16 = int_to_ptr.hbm [resolvable:$true] %s722_s16 }
  0x1d   : > { %605 = vmatmul.msk.bf16.vlgmr.msra.gmra.mxu0 %vm350_vm0, %v329_v4  ;;  %v707_v31 = vld [vmem:[%s965_s8] ss:$0 sm:$0xff]  ;;  %s724_s0 = scalar_lea.hbm %s723_s16, 8  ;;  %p729_p0 = scmp.lt.s32.totalorder %s723_s16, %s966_s9 }
  0x1e   : > { %415 = vmatpush.bf16.msra.mxu1 %v656_v5  ;;  %p725_p11 = scmp.ne.s32.totalorder %s723_s16, %s724_s0  ;;  %p730_p1 = scmp.lt.s32.totalorder %s728_s22, %s724_s0 }
  0x1f   : > { %508 = vmatpush.bf16.msra.mxu3 %v663_v24 }
  0x20   : > { %469 = vmatpush.bf16.msra.mxu2 %v660_v15  ;;  %p726_p12 = pnand %p725_p11, %p860_p5  ;;  %p731_p2 = por %p730_p1, %p729_p0 }
  0x22   : > { %416 = vmatpush.bf16.msra.mxu1 %v655_v6  ;;  %p727_p13 = pneg %p726_p12 }
  0x24   : > { %470 = vmatpush.bf16.msra.mxu2 %v659_v16  ;;  %p732_p3 = pnand %p731_p2, %p727_p13 }
  0x9a   : > { %v363_v10 = vpop.f32.mrf.mxu0 }
  0x9b   : > { %v364_v11 = vadd.f32 %v704_v9, %v363_v10 }
  0x9d   : > { %v367_v12 = vmax.f32 %v364_v11, 0.0 }
  0x9f   : > { %v368_v13 = vpack.c.bf16 %v367_v12, %v367_v12 }
  0xa1   : > { %622 = vmatmul.msk.bf16.vlgmr.msra.gmra.mxu1 %vm405_vm1, %v368_v13 }
  0xa2   : > { %v365_v14 = vpop.f32.mrf.mxu0 }
 0x11e   : > { %v418_v18 = vpop.f32.mrf.mxu1 }
 0x11f   : > { %v419_v19 = vadd.f32 %v705_v17, %v418_v18 }
 0x121   : > { %v422_v20 = vmax.f32 %v419_v19, 0.0 }
 0x123   : > { %v423_v21 = vpack.c.bf16 %v422_v20, %v422_v20 }
 0x125   : > { %639 = vmatmul.msk.bf16.vlgmr.msra.gmra.mxu2 %vm405_vm1, %v423_v21 }
 0x126   : > { %v420_v22 = vpop.f32.mrf.mxu1 }
 0x1a8   : > { %v472_v26 = vpop.f32.mrf.mxu2 }
 0x1a9   : > { %v473_v27 = vadd.f32 %v706_v25, %v472_v26 }
 0x1ab   : > { %v476_v28 = vmax.f32 %v473_v27, 0.0 }
 0x1ad   : > { %v477_v29 = vpack.c.bf16 %v476_v28, %v476_v28 }
 0x1af   : > { %648 = vmatmul.msk.bf16.vlgmr.msra.gmra.mxu3 %vm350_vm0, %v477_v29 }
 0x1b0   : > { %v474_v30 = vpop.f32.mrf.mxu2 }
 0x232   : > { %v510_v32 = vpop.f32.mrf.mxu3 }
 0x233   : > { %v511_v33 = vadd.f32 %v707_v31, %v510_v32 }
 0x235   : > { %515 = vst.msk [vmem:[%s323_s28] sm:$0xff] %vm514_vm2, %v511_v33 }
 0x236   : > { %735 = shalt.err (!%p732_p3)
}
 0x237   : > { %665 = dma.vmem_to_hbm [thread:$0]  (%p860_p5), %s530_s29, 128, %s532_s14, %s517_s13  }
 0x23a   : > { %v512_v34 = vpop.f32.mrf.mxu3 }
 0x23b PF: > { %p671_p4 = scmp.ge.s32.totalorder %s770_s12, 2  ;;  %s543_s17 = sand.u32 1, %s758_s30  }
 0x23c   : > { %s544_s26 = scalar_lea.sflag [#allocation3], %s543_s17 }
 0x23d   : > { %p668_p7 = pnand %p671_p4, %p864_p6 }
 0x23f   : > { %p669_p8 = pneg %p668_p7 }
 0x241   : > { %753 = dma.done.wait (%p669_p8), %s544_s26, 128  }
 0x242   : > { %755 = vsyncadd (%p669_p8), %s544_s26, 4294967168  ;;  %p19_p9 = scmp.ge.s32.totalorder %s847_s15, 4   ;;  %s971_s30 = smov %s762_s10 }
 0x243   : > { %s972_s10 = smov %s766_s11  ;;  %s973_s11 = smov %s858_s18 }
 0x244   : > { %s974_s12 = smov %s847_s15  ;;  %21 = sbr.rel (!%p19_p9) target bundleno = 5 (0x5), region = 91 }
 0x249   :  { %550 = vsyncpa [#allocation3], 1 }
 0x24a   :  { %552 = vsyncpa [#allocation3 + $0x1], 1 }

</bundles_post_ra>
